<compile_context>
chip_gen: v5e
topology: v5e:2x2
jax: 0.10.0
libtpu: 0.0.40
codegen_flags: <defaults>
</compile_context>

<pallas_src>
import functools

import jax
import jax.numpy as jnp
from jax.experimental import pallas as pl
from jax.experimental.pallas import tpu as pltpu


def _router_kernel(h_ref, w_ref, en_ref, inv_tau_ref,
                   sparse_ref, idx_ref, gates_ref,
                   *, top_k: int, approx_reciprocal: bool):
    h = h_ref[...]            # [tm, in_dim]   (f32 or bf16 — fed to MXU as-is)
    W = w_ref[...]            # [d_e, in_dim]  (same dtype as h, resident)
    e_norm = en_ref[...]      # [n_exp, d_e]   (f32, pre-normalized, resident)
    inv_tau = inv_tau_ref[0]  # scalar from SMEM (1/tau hoisted to wrapper)

    # h_proj^T = W @ h^T  -> [d_e, tm]  (contract last axes of both; tokens -> lanes)
    ct_last = (((1,), (1,)), ((), ()))
    h_projT = jax.lax.dot_general(W, h, dimension_numbers=ct_last,
                                  preferred_element_type=jnp.float32)

    # Per-token L2 normalize over d_e (sublane axis):
    # x * rsqrt(max(sum x^2, eps^2)) == x / max(||x||, eps)   (F.normalize semantics)
    eps2 = jnp.float32(1e-24)
    inv_norm = jax.lax.rsqrt(jnp.maximum(
        jnp.sum(h_projT * h_projT, axis=0, keepdims=True), eps2))     # [1, tm]
    h_normT = h_projT * inv_norm

    # scores^T = e_norm @ h_norm^T  (standard contraction) -> [n_exp, tm]
    ct_std = (((1,), (0,)), ((), ()))
    scoresT = jax.lax.dot_general(e_norm, h_normT, dimension_numbers=ct_std,
                                  preferred_element_type=jnp.float32)

    # softmax(scores / tau) over the expert (sublane) axis.
    logits = scoresT * inv_tau
    ex = jnp.exp(logits - jnp.max(logits, axis=0, keepdims=True))
    denom = jnp.sum(ex, axis=0, keepdims=True)                        # [1, tm]
    full_gates = ex * pl.reciprocal(denom, approx=approx_reciprocal)  # [n_exp, tm]
    gates_ref[...] = full_gates

    n_exp, tm = full_gates.shape
    row_ids = jax.lax.broadcasted_iota(jnp.int32, (n_exp, tm), 0)

    # Fused max+argmax: one sublane reduction per top-k step over a packed int32 key.
    # Gates are strictly positive f32, so their bit patterns compare monotonically as
    # signed int32; masked (-1.0) entries bitcast negative and never win.  Low bits
    # carry the reversed expert index -> lowest index wins on ties.
    n_bits = max((n_exp - 1).bit_length(), 1)
    idx_mask = jnp.int32((1 << n_bits) - 1)
    rev_ids = jnp.int32(n_exp - 1) - row_ids

    work = full_gates
    top_idx, top_exp = [], []
    first_val = None
    for j in range(top_k):
        key = (pltpu.bitcast(work, jnp.int32) & (~idx_mask)) | rev_ids
        kmax = jnp.max(key, axis=0, keepdims=True)                    # [1, tm]
        idx_j = jnp.int32(n_exp - 1) - (kmax & idx_mask)              # [1, tm] int32
        val_j = pltpu.bitcast(kmax & (~idx_mask), jnp.float32)        # [1, tm] f32
        top_idx.append(idx_j)
        if j == 0:
            first_val = val_j
            top_exp.append(jnp.ones_like(val_j))        # exp(v0 - v0) == 1 exactly
        else:
            top_exp.append(jnp.exp(val_j - first_val))
        if j + 1 < top_k:
            work = jnp.where(row_ids == idx_j, jnp.float32(-1.0), work)

    idx_ref[...] = jnp.concatenate(top_idx, axis=0)     # [top_k, tm]

    # Top-k re-softmax fused with the scatter, as a select chain on [1, tm] columns.
    k_denom = top_exp[0]
    for e in top_exp[1:]:
        k_denom = k_denom + e
    inv_k = pl.reciprocal(k_denom, approx=approx_reciprocal)

    sparse = jnp.where(row_ids == top_idx[0], top_exp[0] * inv_k, jnp.float32(0.0))
    for j in range(1, top_k):
        sparse = jnp.where(row_ids == top_idx[j], top_exp[j] * inv_k, sparse)
    sparse_ref[...] = sparse


def _vmem_config():
    """Per-generation VMEM limit / tile budget (128-MiB parts vs 64-MiB v7x)."""
    cap = None
    try:
        info = pltpu.get_tpu_info()
        cap = getattr(info, "vmem_capacity_bytes", None)
    except Exception:
        cap = None
    if not cap:
        cap = 64 * 1024 * 1024                       # conservative fallback (v7x-like)
    if cap >= 96 * 1024 * 1024:                      # v5e / v6e class (128 MiB VMEM)
        return dict(vmem_limit=96 * 1024 * 1024, budget=56 * 1024 * 1024,
                    max_tile=8192, force_two_steps=False)
    return dict(vmem_limit=32 * 1024 * 1024, budget=20 * 1024 * 1024,
                max_tile=4096, force_two_steps=True)  # v7x: 64 MiB VMEM, 2 TCs/chip


def _choose_tile_m(num_tokens, in_dim, d_e, n_exp, top_k, h_itemsize, cfg):
    """Largest token tile (multiple of 128 lanes) that fits the VMEM budget."""
    budget = cfg["budget"]
    # Resident, single-buffered operands: W [d_e, in_dim] + e_norm [n_exp, d_e] (f32).
    budget -= d_e * in_dim * h_itemsize + n_exp * d_e * 4
    budget = max(budget, 1 << 20)
    # Pipelined (double-buffered) per-token-column bytes: h in + 3 outputs out.
    per_col = 2 * (in_dim * h_itemsize + (2 * n_exp + top_k) * 4)
    # f32 in-body intermediates ([d_e,tm] x2, [n_exp,tm] x ~8 incl. iota/keys, [1,tm] few).
    per_col += (2 * d_e + 8 * n_exp + 8) * 4
    tile = int(budget // max(per_col, 1))
    tile = min(tile, cfg["max_tile"])
    tile = max((tile // 128) * 128, 128)
    num_pad128 = -(-num_tokens // 128) * 128
    if cfg["force_two_steps"] and num_pad128 >= 256:
        # Keep >= 2 grid steps so both v7x TensorCores get work ("parallel" axis).
        tile = min(tile, max(128, (num_pad128 // 2) // 128 * 128))
    return min(tile, num_pad128)


def cosine_router_forward(h, W, expert_embeddings, tau, top_k,
                          *, tile_m=None, approx_reciprocal=True):
    """Returns (sparse_gates, topk_indices, full_gates), like the PyTorch forward."""
    num, in_dim = h.shape
    n_exp, d_e = expert_embeddings.shape
    assert W.shape == (d_e, in_dim)
    assert 1 <= top_k <= n_exp

    # Keep both MXU operands of the first matmul in the same (possibly bf16) dtype.
    W = W.astype(h.dtype)
    h_itemsize = jnp.dtype(h.dtype).itemsize

    # Token-independent work hoisted out of the per-tile body:
    # pre-normalize the expert embeddings (tiny [n_exp, d_e]) and invert tau once.
    e32 = expert_embeddings.astype(jnp.float32)
    e_norm = e32 * jax.lax.rsqrt(
        jnp.maximum(jnp.sum(e32 * e32, axis=1, keepdims=True), 1e-24))
    inv_tau_arr = (1.0 / jnp.asarray(tau, jnp.float32)).reshape((1,))

    cfg = _vmem_config()
    num_pad128 = -(-num // 128) * 128
    if tile_m is None:
        tile_m = _choose_tile_m(num, in_dim, d_e, n_exp, top_k, h_itemsize, cfg)
    else:
        tile_m = max(128, -(-int(tile_m) // 128) * 128)   # token tile = lane axis
        tile_m = min(tile_m, num_pad128)

    num_pad = -(-num // tile_m) * tile_m
    if num_pad != num:
        # Padded rows produce harmless finite gates/indices; sliced off below.
        h = jnp.pad(h, ((0, num_pad - num), (0, 0)))

    flops = 2 * num_pad * in_dim * d_e + 2 * num_pad * d_e * n_exp
    transcendentals = num_pad * (n_exp + top_k + 2)
    bytes_accessed = (num_pad * in_dim * h_itemsize
                      + d_e * in_dim * h_itemsize + n_exp * d_e * 4
                      + num_pad * (2 * n_exp + top_k) * 4)
    cost = pl.CostEstimate(flops=flops, transcendentals=transcendentals,
                           bytes_accessed=bytes_accessed)

    kernel = functools.partial(_router_kernel, top_k=top_k,
                               approx_reciprocal=approx_reciprocal)

    # Lane-dense (token-major on lanes) output slabs; transposed back below.
    sparse_t, idx_t, gates_t = pl.pallas_call(
        kernel,
        out_shape=(
            jax.ShapeDtypeStruct((n_exp, num_pad), jnp.float32),   # sparse_gates^T
            jax.ShapeDtypeStruct((top_k, num_pad), jnp.int32),     # topk_indices^T
            jax.ShapeDtypeStruct((n_exp, num_pad), jnp.float32),   # full_gates^T
        ),
        grid=(num_pad // tile_m,),
        in_specs=[
            pl.BlockSpec((tile_m, in_dim), lambda i: (i, 0)),      # h (pipelined)
            pl.BlockSpec((d_e, in_dim), lambda i: (0, 0),
                         pipeline_mode=pl.Buffered(1)),            # W (resident, 1 buf)
            pl.BlockSpec((n_exp, d_e), lambda i: (0, 0),
                         pipeline_mode=pl.Buffered(1)),            # e_norm (resident)
            pl.BlockSpec(memory_space=pltpu.MemorySpace.SMEM),     # 1/tau (scalar)
        ],
        out_specs=(
            pl.BlockSpec((n_exp, tile_m), lambda i: (0, i)),
            pl.BlockSpec((top_k, tile_m), lambda i: (0, i)),
            pl.BlockSpec((n_exp, tile_m), lambda i: (0, i)),
        ),
        compiler_params=pltpu.CompilerParams(
            dimension_semantics=("parallel",),                     # megacore on v7x
            vmem_limit_bytes=cfg["vmem_limit"],
        ),
        cost_estimate=cost,
    )(h, W, e_norm, inv_tau_arr)

    sparse = sparse_t.T[:num]
    idx = idx_t.T[:num]
    gates = gates_t.T[:num]
    return sparse, idx, gates


def init_params(key, in_dim, num_experts, d_e=None,
                init_expert_norm=0.1, init_tau=1.0):
    """Deterministic parameter init mirroring Cosine_Router.__init__ (host-side JAX)."""
    if d_e is None:
        d_e = num_experts
    k_w, k_m = jax.random.split(key)
    # xavier_uniform_ for W: [d_e, in_dim]
    limit = jnp.sqrt(6.0 / (d_e + in_dim))
    W = jax.random.uniform(k_w, (d_e, in_dim), jnp.float32, -limit, limit)
    # orthonormal expert embeddings via SVD, scaled to the requested L2 norm.
    M = jax.random.normal(k_m, (d_e, d_e), jnp.float32)
    U, _, _ = jnp.linalg.svd(M)
    expert_embeddings = U[:num_experts, :] * init_expert_norm
    tau = jnp.float32(init_tau)
    return W, expert_embeddings, tau


if __name__ == "__main__":
    in_dim = 32
    num_experts = 8
    top_k = 2
    num_tokens = 300         # NOT a multiple of 128 -> exercises padding + slicing

    key = jax.random.PRNGKey(0)
    k_h, k_params = jax.random.split(key)

    h = jax.random.normal(k_h, (num_tokens, in_dim), jnp.float32)
    W, expert_embeddings, tau = init_params(
        k_params, in_dim, num_experts, d_e=None,
        init_expert_norm=0.1, init_tau=1.0)

    # f32 run with a 128-token tile so the grid has several steps (pipelined path).
    sparse_gates, topk_indices, full_gates = cosine_router_forward(
        h, W, expert_embeddings, tau, top_k, tile_m=128)
    jax.block_until_ready((sparse_gates, topk_indices, full_gates))

    # Pure-JAX reference.
    h_proj = h @ W.T
    h_norm = h_proj / jnp.maximum(
        jnp.linalg.norm(h_proj, axis=1, keepdims=True), 1e-12)
    e_norm_ref = expert_embeddings / jnp.maximum(
        jnp.linalg.norm(expert_embeddings, axis=1, keepdims=True), 1e-12)
    scores = h_norm @ e_norm_ref.T
    fg_ref = jax.nn.softmax(scores / tau, axis=1)
    tv_ref, ti_ref = jax.lax.top_k(fg_ref, top_k)
    nt_ref = jax.nn.softmax(tv_ref, axis=1)
    sg_ref = jnp.zeros_like(fg_ref).at[
        jnp.arange(num_tokens)[:, None], ti_ref].set(nt_ref)

    # Expert selection must match exactly; gate values use the approximate EUP
    # reciprocal in the softmax denominators, so allow a modest tolerance.
    assert jnp.array_equal(topk_indices, ti_ref), "topk_indices mismatch"
    assert jnp.allclose(full_gates, fg_ref, atol=1e-2, rtol=1e-2), "full_gates mismatch"
    assert jnp.allclose(sparse_gates, sg_ref, atol=1e-2, rtol=1e-2), "sparse_gates mismatch"

    # bf16 input path (halves HBM traffic on h; MXU takes bf16 natively), auto tile.
    hb = h.astype(jnp.bfloat16)
    sg_b, ti_b, fg_b = cosine_router_forward(
        hb, W, expert_embeddings, tau, top_k)
    jax.block_until_ready((sg_b, ti_b, fg_b))
    assert jnp.allclose(jnp.sum(fg_b, axis=1), 1.0, atol=2e-2)
    assert jnp.allclose(jnp.sum(sg_b, axis=1), 1.0, atol=2e-2)
    assert bool(jnp.all((ti_b >= 0) & (ti_b < num_experts)))

    print("KERNEL_OK")
</pallas_src>

<mosaic_0001>
module attributes {stable_mosaic.version = 11 : i64} {
  func.func @_router_kernel(%arg0: i32, %arg1: memref<128x32xf32, #tpu.memory_space<vmem>>, %arg2: memref<8x32xf32, #tpu.memory_space<vmem>>, %arg3: memref<8x8xf32, #tpu.memory_space<vmem>>, %arg4: memref<1xf32, #tpu.memory_space<smem>>, %arg5: memref<8x128xf32, #tpu.memory_space<vmem>>, %arg6: memref<2x128xi32, #tpu.memory_space<vmem>>, %arg7: memref<8x128xf32, #tpu.memory_space<vmem>>) attributes {dimension_semantics = [#tpu.dimension_semantics<parallel>], iteration_bounds = array<i64: 3>, scalar_prefetch = 0 : i64, scratch_operands = 0 : i64, tpu.core_type = #tpu.core_type<tc>, window_params = [{transform_indices = @transform_0, window_bounds = array<i64: 128, 32>}, {pipeline_mode = #tpu.pipeline_mode<synchronous>, transform_indices = @transform_1, window_bounds = array<i64: 8, 32>}, {pipeline_mode = #tpu.pipeline_mode<synchronous>, transform_indices = @transform_2, window_bounds = array<i64: 8, 8>}, {transform_indices = @transform_3, window_bounds = array<i64: 1>}, {transform_indices = @transform_4, window_bounds = array<i64: 8, 128>}, {transform_indices = @transform_5, window_bounds = array<i64: 2, 128>}, {transform_indices = @transform_6, window_bounds = array<i64: 8, 128>}]} {
    %c0 = arith.constant 0 : index
    %c0_0 = arith.constant 0 : index
    %0 = vector.load %arg1[%c0, %c0_0] : memref<128x32xf32, #tpu.memory_space<vmem>>, vector<128x32xf32>
    %c0_1 = arith.constant 0 : index
    %c0_2 = arith.constant 0 : index
    %1 = vector.load %arg2[%c0_1, %c0_2] : memref<8x32xf32, #tpu.memory_space<vmem>>, vector<8x32xf32>
    %c0_3 = arith.constant 0 : index
    %c0_4 = arith.constant 0 : index
    %2 = vector.load %arg3[%c0_3, %c0_4] : memref<8x8xf32, #tpu.memory_space<vmem>>, vector<8x8xf32>
    %c0_5 = arith.constant 0 : index
    %3 = memref.load %arg4[%c0_5] : memref<1xf32, #tpu.memory_space<smem>>
    %cst = arith.constant dense<0.000000e+00> : vector<8x128xf32>
    %4 = tpu.matmul %1, %0, %cst {dimension_numbers = #tpu.dot_dimension_numbers<[1], [1], [0], [0], [0, 0, 1, 0], [], []>} : vector<8x32xf32>, vector<128x32xf32>, vector<8x128xf32> -> vector<8x128xf32>
    %5 = arith.mulf %4, %4 : vector<8x128xf32>
    %cst_6 = arith.constant dense<0.000000e+00> : vector<128xf32>
    %6 = vector.multi_reduction <add>, %5, %cst_6 [0] : vector<8x128xf32> to vector<128xf32>
    %7 = vector.shape_cast %6 : vector<128xf32> to vector<1x128xf32>
    %cst_7 = arith.constant 1.000000e-24 : f32
    %8 = vector.broadcast %cst_7 : f32 to vector<1x128xf32>
    %9 = arith.maximumf %7, %8 : vector<1x128xf32>
    %10 = math.rsqrt %9 : vector<1x128xf32>
    %11 = vector.broadcast %10 : vector<1x128xf32> to vector<8x128xf32>
    %12 = arith.mulf %4, %11 : vector<8x128xf32>
    %cst_8 = arith.constant dense<0.000000e+00> : vector<8x128xf32>
    %13 = tpu.matmul %2, %12, %cst_8 {dimension_numbers = #tpu.dot_dimension_numbers<[1], [0], [0], [1], [0, 0, 1, 1], [], []>} : vector<8x8xf32>, vector<8x128xf32>, vector<8x128xf32> -> vector<8x128xf32>
    %14 = vector.broadcast %3 : f32 to vector<8x128xf32>
    %15 = arith.mulf %13, %14 : vector<8x128xf32>
    %cst_9 = arith.constant dense<0xFF800000> : vector<128xf32>
    %16 = vector.multi_reduction <maximumf>, %15, %cst_9 [0] : vector<8x128xf32> to vector<128xf32>
    %17 = vector.shape_cast %16 : vector<128xf32> to vector<1x128xf32>
    %18 = vector.broadcast %17 : vector<1x128xf32> to vector<8x128xf32>
    %19 = arith.subf %15, %18 : vector<8x128xf32>
    %20 = math.exp %19 : vector<8x128xf32>
    %cst_10 = arith.constant dense<0.000000e+00> : vector<128xf32>
    %21 = vector.multi_reduction <add>, %20, %cst_10 [0] : vector<8x128xf32> to vector<128xf32>
    %22 = vector.shape_cast %21 : vector<128xf32> to vector<1x128xf32>
    %23 = tpu.reciprocal %22 {approx = true} : vector<1x128xf32> -> vector<1x128xf32>
    %24 = vector.broadcast %23 : vector<1x128xf32> to vector<8x128xf32>
    %25 = arith.mulf %20, %24 : vector<8x128xf32>
    %c0_11 = arith.constant 0 : index
    %c0_12 = arith.constant 0 : index
    %26 = vector.load %arg7[%c0_11, %c0_12] : memref<8x128xf32, #tpu.memory_space<vmem>>, vector<8x128xf32>
    tpu.vector_store %arg7[%c0_11, %c0_12], %25 {strides = array<i32>} : memref<8x128xf32, #tpu.memory_space<vmem>>, vector<8x128xf32>,
    %27 = tpu.iota {dimensions = array<i32: 0>} : vector<8x128xi32>
    %c7_i32 = arith.constant 7 : i32
    %28 = vector.broadcast %c7_i32 : i32 to vector<8x128xi32>
    %29 = arith.subi %28, %27 : vector<8x128xi32>
    %30 = tpu.bitcast %25 : vector<8x128xf32> -> vector<8x128xi32>
    %c7_i32_13 = arith.constant 7 : i32
    %c-1_i32 = arith.constant -1 : i32
    %31 = arith.xori %c7_i32_13, %c-1_i32 : i32
    %32 = vector.broadcast %31 : i32 to vector<8x128xi32>
    %33 = arith.andi %30, %32 : vector<8x128xi32>
    %34 = arith.ori %33, %29 : vector<8x128xi32>
    %cst_14 = arith.constant dense<-2147483648> : vector<128xi32>
    %35 = vector.multi_reduction <maxsi>, %34, %cst_14 [0] : vector<8x128xi32> to vector<128xi32>
    %36 = vector.shape_cast %35 : vector<128xi32> to vector<1x128xi32>
    %c7_i32_15 = arith.constant 7 : i32
    %37 = vector.broadcast %c7_i32_15 : i32 to vector<1x128xi32>
    %38 = arith.andi %36, %37 : vector<1x128xi32>
    %c7_i32_16 = arith.constant 7 : i32
    %39 = vector.broadcast %c7_i32_16 : i32 to vector<1x128xi32>
    %40 = arith.subi %39, %38 : vector<1x128xi32>
    %c7_i32_17 = arith.constant 7 : i32
    %c-1_i32_18 = arith.constant -1 : i32
    %41 = arith.xori %c7_i32_17, %c-1_i32_18 : i32
    %42 = vector.broadcast %41 : i32 to vector<1x128xi32>
    %43 = arith.andi %36, %42 : vector<1x128xi32>
    %44 = tpu.bitcast %43 : vector<1x128xi32> -> vector<1x128xf32>
    %cst_19 = arith.constant 1.000000e+00 : f32
    %45 = vector.broadcast %cst_19 : f32 to vector<1x128xf32>
    %46 = vector.broadcast %40 : vector<1x128xi32> to vector<8x128xi32>
    %47 = arith.cmpi eq, %27, %46 : vector<8x128xi32>
    %cst_20 = arith.constant -1.000000e+00 : f32
    %48 = vector.broadcast %cst_20 : f32 to vector<8x128xf32>
    %49 = arith.select %47, %48, %25 : vector<8x128xi1>, vector<8x128xf32>
    %50 = tpu.bitcast %49 : vector<8x128xf32> -> vector<8x128xi32>
    %c7_i32_21 = arith.constant 7 : i32
    %c-1_i32_22 = arith.constant -1 : i32
    %51 = arith.xori %c7_i32_21, %c-1_i32_22 : i32
    %52 = vector.broadcast %51 : i32 to vector<8x128xi32>
    %53 = arith.andi %50, %52 : vector<8x128xi32>
    %54 = arith.ori %53, %29 : vector<8x128xi32>
    %cst_23 = arith.constant dense<-2147483648> : vector<128xi32>
    %55 = vector.multi_reduction <maxsi>, %54, %cst_23 [0] : vector<8x128xi32> to vector<128xi32>
    %56 = vector.shape_cast %55 : vector<128xi32> to vector<1x128xi32>
    %c7_i32_24 = arith.constant 7 : i32
    %57 = vector.broadcast %c7_i32_24 : i32 to vector<1x128xi32>
    %58 = arith.andi %56, %57 : vector<1x128xi32>
    %c7_i32_25 = arith.constant 7 : i32
    %59 = vector.broadcast %c7_i32_25 : i32 to vector<1x128xi32>
    %60 = arith.subi %59, %58 : vector<1x128xi32>
    %c7_i32_26 = arith.constant 7 : i32
    %c-1_i32_27 = arith.constant -1 : i32
    %61 = arith.xori %c7_i32_26, %c-1_i32_27 : i32
    %62 = vector.broadcast %61 : i32 to vector<1x128xi32>
    %63 = arith.andi %56, %62 : vector<1x128xi32>
    %64 = tpu.bitcast %63 : vector<1x128xi32> -> vector<1x128xf32>
    %65 = arith.subf %64, %44 : vector<1x128xf32>
    %66 = math.exp %65 : vector<1x128xf32>
    %67 = tpu.concatenate %40, %60 in 0 : vector<1x128xi32>, vector<1x128xi32> -> vector<2x128xi32>
    %c0_28 = arith.constant 0 : index
    %c0_29 = arith.constant 0 : index
    %68 = vector.load %arg6[%c0_28, %c0_29] : memref<2x128xi32, #tpu.memory_space<vmem>>, vector<2x128xi32>
    tpu.vector_store %arg6[%c0_28, %c0_29], %67 {strides = array<i32>} : memref<2x128xi32, #tpu.memory_space<vmem>>, vector<2x128xi32>,
    %69 = arith.addf %45, %66 : vector<1x128xf32>
    %70 = tpu.reciprocal %69 {approx = true} : vector<1x128xf32> -> vector<1x128xf32>
    %71 = vector.broadcast %40 : vector<1x128xi32> to vector<8x128xi32>
    %72 = arith.cmpi eq, %27, %71 : vector<8x128xi32>
    %73 = arith.mulf %45, %70 : vector<1x128xf32>
    %cst_30 = arith.constant 0.000000e+00 : f32
    %74 = vector.shape_cast %73 : vector<1x128xf32> to vector<1x128xf32>
    %75 = vector.broadcast %74 : vector<1x128xf32> to vector<8x128xf32>
    %76 = vector.broadcast %cst_30 : f32 to vector<8x128xf32>
    %77 = arith.select %72, %75, %76 : vector<8x128xi1>, vector<8x128xf32>
    %78 = vector.broadcast %60 : vector<1x128xi32> to vector<8x128xi32>
    %79 = arith.cmpi eq, %27, %78 : vector<8x128xi32>
    %80 = arith.mulf %66, %70 : vector<1x128xf32>
    %81 = vector.shape_cast %80 : vector<1x128xf32> to vector<1x128xf32>
    %82 = vector.broadcast %81 : vector<1x128xf32> to vector<8x128xf32>
    %83 = arith.select %79, %82, %77 : vector<8x128xi1>, vector<8x128xf32>
    %c0_31 = arith.constant 0 : index
    %c0_32 = arith.constant 0 : index
    %84 = vector.load %arg5[%c0_31, %c0_32] : memref<8x128xf32, #tpu.memory_space<vmem>>, vector<8x128xf32>
    tpu.vector_store %arg5[%c0_31, %c0_32], %83 {strides = array<i32>} : memref<8x128xf32, #tpu.memory_space<vmem>>, vector<8x128xf32>,
    return
  }
  func.func @transform_0(%arg0: i32) -> (i32, i32) {
    %c0_i32 = arith.constant 0 : i32
    %c0_i32_0 = arith.constant 0 : i32
    return %arg0, %c0_i32 : i32, i32
  }
  func.func @transform_1(%arg0: i32) -> (i32, i32) {
    %c0_i32 = arith.constant 0 : i32
    %c0_i32_0 = arith.constant 0 : i32
    %c0_i32_1 = arith.constant 0 : i32
    return %c0_i32, %c0_i32_0 : i32, i32
  }
  func.func @transform_2(%arg0: i32) -> (i32, i32) {
    %c0_i32 = arith.constant 0 : i32
    %c0_i32_0 = arith.constant 0 : i32
    %c0_i32_1 = arith.constant 0 : i32
    return %c0_i32, %c0_i32_0 : i32, i32
  }
  func.func @transform_3(%arg0: i32) -> i32 {
    %c0_i32 = arith.constant 0 : i32
    %c0_i32_0 = arith.constant 0 : i32
    return %c0_i32 : i32
  }
  func.func @transform_4(%arg0: i32) -> (i32, i32) {
    %c0_i32 = arith.constant 0 : i32
    %c0_i32_0 = arith.constant 0 : i32
    return %c0_i32, %arg0 : i32, i32
  }
  func.func @transform_5(%arg0: i32) -> (i32, i32) {
    %c0_i32 = arith.constant 0 : i32
    %c0_i32_0 = arith.constant 0 : i32
    return %c0_i32, %arg0 : i32, i32
  }
  func.func @transform_6(%arg0: i32) -> (i32, i32) {
    %c0_i32 = arith.constant 0 : i32
    %c0_i32_0 = arith.constant 0 : i32
    return %c0_i32, %arg0 : i32, i32
  }
}

</mosaic_0001>

<bundles_post_ra>
// kernel: tpu_custom_call.1
= control target key start
LH: loop header
LB: loop body
LE: loop exit
PB: predicated region body
PF: predicated region fallthrough
CT: control target
= control target key end

     0   :  { %s1103_s0 = inlined_call_operand.vmem [shape: f32[384,32], index: 0, kind: input, shape index: {}]   ;;  %s1104_s1 = inlined_call_operand.vmem [shape: f32[8,32], index: 1, kind: input, shape index: {}]   ;;  %s1105_s2 = inlined_call_operand.vmem [shape: f32[8,8], index: 2, kind: input, shape index: {}]   ;;  %s1106_s3 = inlined_call_operand.<no memory space> [shape: f32[1], index: 3, kind: input, shape index: {}]   ;;  %s1107_s4 = inlined_call_operand.hbm [shape: f32[8,384], index: 4, kind: output, shape index: {0}]   ;;  %s1108_s5 = inlined_call_operand.hbm [shape: s32[2,384], index: 5, kind: output, shape index: {1}]   ;;  %s1109_s6 = inlined_call_operand.hbm [shape: f32[8,384], index: 6, kind: output, shape index: {2}]  }
   0x1   :  { %1112 = sst [smem:[#allocation10_spill]] %s1103_s0 }
   0x2   :  { %12 = sst [smem:[#allocation2]] %s1106_s3 }
   0x3   :  { %13 = vsyncpa [#allocation4], 0 }
   0x4   :  { %15 = vsyncpa [#allocation4 + $0x1], 0 }
   0x5   :  { %16 = vsyncpa [#allocation6], 0 }
   0x6   :  { %18 = vsyncpa [#allocation6 + $0x1], 0  ;;  %s907_s23 = smov 0   ;;  %s909_s24 = smov 0  }
   0x7   :  { %s911_s25 = smov 0   ;;  %s913_s26 = smov 0  }
   0x8 LB: > { %s928_s3 = sadd.s32 4294967295, %s867_s26   ;;  %s1110_s27 = sadd.s32 4294967294, %s867_s26   ;;  %s867_s26 = sphi %s913_s26, %s1121_s26   ;;  %s863_s25 = sphi %s911_s25, %s1120_s25   ;;  %s859_s24 = sphi %s909_s24, %s1119_s24   ;;  %s855_s23 = sphi %s907_s23, %s1118_s23  }
   0x9   : > { %s932_s28 = sadd.s32 1, %s867_s26   ;;  %s120_s29 = sadd.s32 1, %s863_s25 }
   0xa   : > { %s117_s30 = ssub.s32 %s867_s26, %s932_s28  ;;  %p130_p0 = scmp.ne.s32.totalorder %s863_s25, %s859_s24 }
   0xb   : > { %p118_p1 = scmp.eq.s32.totalorder %s117_s30, 0  ;;  %p131_p2 = scmp.eq.s32.totalorder %s928_s3, 2 }
   0xc   : > { %p136_p3 = scmp.ne.s32.totalorder %s859_s24, %s855_s23  ;;  %p137_p4 = scmp.eq.s32.totalorder %s1110_s27, 2 }
   0xd   : > { %s945_s7 = scalar_select %p118_p1, %s863_s25, %s120_s29  }
   0xe   : > { %p947_p5 = por %p131_p2, %p130_p0  ;;  %p951_p6 = por %p137_p4, %p136_p3 }
   0xf   : > { %p654_p7 = scmp.ge.s32.totalorder %s867_s26, 1  ;;  %p225_p8 = scmp.lt.s32.totalorder %s867_s26, 4 }
  0x11   : > { %p226_p9 = pnand %p654_p7, %p225_p8 }
  0x12   : > { %s658_s10 = sshll.u32 (!%p226_p9), %s928_s3, 4  ;;  %s1115_s0 = sld [smem:[#allocation10_spill]] (!%p226_p9) }
  0x13   : > { %229 = sbr.rel (%p226_p9) target bundleno = 500 (0x1f4), region = 36  ;;  %p266_p10 = scmp.lt.s32.totalorder (!%p226_p9), %s658_s10, 47 }
  0x14   : > { %s289_s19 = sld [smem:[#allocation2]] (!%p226_p9)  ;;  %s1003_s20 = sand.u32 (!%p226_p9), 1, %s859_s24  }
  0x15   : > { %s1111_s21 = sshll.u32 (!%p226_p9), %s1003_s20, 3  ;;  %s682_s29 = sshll.u32 (!%p226_p9), %s928_s3, 1 }
  0x16   : > { %s1011_s22 = scalar_lea.vmem (!%p226_p9), [#allocation7], %s1111_s21  ;;  %s681_s30 = sshll.u32 (!%p226_p9), %s928_s3, 3 }
  0x17   : > { %s510_s13 = scalar_lea.hbm (!%p226_p9), %s1108_s5, %s682_s29  ;;  %s524_s16 = scalar_lea.hbm (!%p226_p9), %s1109_s6, %s681_s30 }
  0x18   : > { %s1123_s10 = smov (!%p266_p10, %s658_s10), 47  ;;  %vm290_vm0 = vcmask 261120   ;;  %v287_v16 = vld [vmem:[%s1104_s1] sm:$0xff]  ;;  %vm381_vm4 = vcmask 64512   ;;  %v425_v53 = vlaneseq  ;;  %s480_s17 = sand.u32 1, %s928_s3   ;;  %vm465_vm12 = vcmask 1040384  }
  0x19   : > { %s659_s11 = sshll.u32 %s1123_s10, 3  ;;  %v288_v34 = vld [vmem:[%s1105_s2] sm:$0xff]  ;;  %s656_s10 = sshll.u32 %s1003_s20, 1 }
  0x1a   : > { %s961_s14 = scalar_lea.vmem %s1115_s0, %s659_s11  ;;  %v405_v35 = vstv %s289_s19  ;;  %v1005_v54 = vshrl.u32 %v425_v53, 7  ;;  %s257_s18 = scalar_lea.vmem [#allocation5], %s656_s10 }
  0x1b   : > { %v286_v0 = vld [vmem:[%s961_s14 + $0x78] sm:$0xff]  ;;  %v285_v1 = vld [vmem:[%s961_s14 + $0x70] sm:$0xff]  ;;  %v284_v2 = vld [vmem:[%s961_s14 + $0x68] sm:$0xff]  ;;  %s512_s19 = sshll.u32 %s257_s18, 4  ;;  %s514_s27 = sshll.u32 %s510_s13, 4  ;;  %s513_s19 = int_to_ptr.vmem [resolvable:$true] %s512_s19  ;;  %s515_s27 = int_to_ptr.hbm [resolvable:$true] %s514_s27 }
  0x1c   : > { %660 = vmatpush.xpose.msk.msra.mxu0 %vm290_vm0, %v286_v0  ;;  %v283_v3 = vld [vmem:[%s961_s14 + $0x60] sm:$0xff]  ;;  %v282_v4 = vld [vmem:[%s961_s14 + $0x58] sm:$0xff]  ;;  %v281_v5 = vld [vmem:[%s961_s14 + $0x50] sm:$0xff]  ;;  %v427_v57 = vsub.s32 7, %v1005_v54  ;;  %s526_s21 = sshll.u32 %s1011_s22, 4  ;;  %s528_s0 = sshll.u32 %s524_s16, 4  ;;  %s1035_s21 = int_to_ptr.vmem [resolvable:$true] %s526_s21  ;;  %s1037_s0 = int_to_ptr.hbm [resolvable:$true] %s528_s0 }
  0x1d   : > { %v280_v6 = vld [vmem:[%s961_s14 + $0x48] sm:$0xff]  ;;  %v279_v7 = vld [vmem:[%s961_s14 + $0x40] sm:$0xff]  ;;  %v278_v8 = vld [vmem:[%s961_s14 + $0x38] sm:$0xff]  ;;  %s481_s29 = scalar_lea.sflag [#allocation6], %s480_s17  ;;  %s759_s10 = sshra.s32 %s515_s27, 4  ;;  %s760_s10 = int_to_ptr.hbm [resolvable:$true] %s759_s10 }
  0x1e   : > { %v277_v9 = vld [vmem:[%s961_s14 + $0x30] sm:$0xff]  ;;  %v276_v10 = vld [vmem:[%s961_s14 + $0x28] sm:$0xff]  ;;  %v275_v11 = vld [vmem:[%s961_s14 + $0x20] sm:$0xff]  ;;  %s761_s11 = scalar_lea.hbm %s760_s10, 2  ;;  %s765_s13 = scalar_lea.hbm %s1108_s5, 6 }
  0x1f   : > { %v274_v12 = vld [vmem:[%s961_s14 + $0x18] sm:$0xff]  ;;  %v273_v13 = vld [vmem:[%s961_s14 + $0x10] sm:$0xff]  ;;  %v272_v14 = vld [vmem:[%s961_s14 + $0x8] sm:$0xff]  ;;  %p762_p11 = scmp.ne.s32.totalorder %s760_s10, %s761_s11  ;;  %p766_p0 = scmp.lt.s32.totalorder %s760_s10, %s1108_s5 }
  0x20   : > { %661 = vmatpush.xpose.msk.msra.mxu0 %vm290_vm0, %v285_v1  ;;  %v271_v15 = vld [vmem:[%s961_s14] sm:$0xff]  ;;  %p767_p1 = scmp.lt.s32.totalorder %s765_s13, %s761_s11 }
  0x21   : > { %p763_p12 = pnand %p762_p11, %p947_p5 }
  0x22   : > { %p768_p2 = por %p767_p1, %p766_p0 }
  0x23   : > { %p764_p13 = pneg %p763_p12 }
  0x24   : > { %662 = vmatpush.xpose.msk.msra.mxu0 %vm290_vm0, %v284_v2 }
  0x25   : > { %p769_p3 = pnand %p768_p2, %p764_p13 }
  0x28   : > { %663 = vmatpush.xpose.msk.msra.mxu0 %vm290_vm0, %v283_v3 }
  0x2c   : > { %664 = vmatpush.xpose.msk.msra.mxu0 %vm290_vm0, %v282_v4 }
  0x30   : > { %665 = vmatpush.xpose.msk.msra.mxu0 %vm290_vm0, %v281_v5 }
  0x34   : > { %666 = vmatpush.xpose.msk.msra.mxu0 %vm290_vm0, %v280_v6 }
  0x38   : > { %667 = vmatpush.xpose.msk.msra.mxu0 %vm290_vm0, %v279_v7 }
  0x3c   : > { %668 = vmatpush.xpose.msk.msra.mxu0 %vm290_vm0, %v278_v8 }
  0x40   : > { %669 = vmatpush.xpose.msk.msra.mxu0 %vm290_vm0, %v277_v9 }
  0x44   : > { %670 = vmatpush.xpose.msk.msra.mxu0 %vm290_vm0, %v276_v10 }
  0x48   : > { %671 = vmatpush.xpose.msk.msra.mxu0 %vm290_vm0, %v275_v11 }
  0x4c   : > { %672 = vmatpush.xpose.msk.msra.mxu0 %vm290_vm0, %v274_v12 }
  0x50   : > { %673 = vmatpush.xpose.msk.msra.mxu0 %vm290_vm0, %v273_v13 }
  0x54   : > { %674 = vmatpush.xpose.msk.msra.mxu0 %vm290_vm0, %v272_v14 }
  0x58   : > { %675 = vmatpush.xpose.msk.msra.mxu0 %vm290_vm0, %v271_v15 }
  0x5b   : > { %676 = vmatmul.msk.f32.vlgmr.msra.gmra.mxu0 %vm290_vm0, %v287_v16 }
  0xd8   : > { %v359_v17 = vpop.f32.mrf.mxu0 }
  0xd9   : > { %v362_v18 = vmul.f32 %v359_v17, %v359_v17 }
  0xdb   : > { %v363_v19 = vrot.slane %v362_v18, 4 }
  0xdd   : > { %v364_v20 = vadd.f32 %v363_v19, %v362_v18 }
  0xdf   : > { %v365_v21 = vrot.slane %v364_v20, 2 }
  0xe1   : > { %v366_v22 = vadd.f32 %v365_v21, %v364_v20 }
  0xe3   : > { %v367_v23 = vrot.slane %v366_v22, 1 }
  0xe5   : > { %v368_v24 = vadd.f32 %v367_v23, %v366_v22 }
  0xe7   : > { %v369_v25 = vmax.f32 %v368_v24, 1e-24 }
  0xe9   : > { %735 = vrsqrt.f32 %v369_v25  ;;  %vm376_vm2 = vweird.f32 %v369_v25 }
  0xef   : > { %v736_v26 = vpop.eup %735 }
  0xf0   : > { %v371_v27 = vmul.f32 %v736_v26, %v369_v25  ;;  %vm377_vm1 = vweird.f32 %v736_v26 }
  0xf1   : > { %vm378_vm3 = vmor %vm376_vm2, %vm377_vm1 }
  0xf2   : > { %v372_v28 = vmul.f32 %v736_v26, %v371_v27 }
  0xf4   : > { %v373_v29 = vmul.f32 0.5, %v372_v28 }
  0xf6   : > { %v374_v30 = vsub.f32 1.5, %v373_v29 }
  0xf8   : > { %v375_v31 = vmul.f32 %v736_v26, %v374_v30 }
  0xfa   : > { %v379_v32 = vsel %vm378_vm3, %v736_v26, %v375_v31 }
  0xfb   : > { %v380_v33 = vmul.f32 %v379_v32, %v359_v17 }
  0xfd   : > { %400 = vmatpush.msra.mxu1 %v380_v33 }
  0xfe   : > { %677 = vmatmul.msk.f32.vlgmr.msra.gmra.mxu1 %vm381_vm4, %v288_v34 }
 0x17b   : > { %v402_v36 = vpop.f32.mrf.mxu1 }
 0x17c   : > { %v406_v37 = vmul.f32 %v405_v35, %v402_v36 }
 0x17e   : > { %v407_v38 = vrot.slane %v406_v37, 4 }
 0x180   : > { %v408_v39 = vmax.f32 %v406_v37, %v407_v38 }
 0x182   : > { %v409_v40 = vrot.slane %v408_v39, 2 }
 0x184   : > { %v410_v41 = vmax.f32 %v408_v39, %v409_v40 }
 0x186   : > { %v411_v42 = vrot.slane %v410_v41, 1 }
 0x188   : > { %v412_v43 = vmax.f32 %v410_v41, %v411_v42 }
 0x18a   : > { %v413_v44 = vsub.f32 %v406_v37, %v412_v43 }
 0x18c   : > { %v414_v45 = vmul.f32 1.442695, %v413_v44 }
 0x18e   : > { %737 = vpow2.f32 %v414_v45 }
 0x194   : > { %v738_v46 = vpop.eup %737 }
 0x195   : > { %v416_v47 = vrot.slane %v738_v46, 4 }
 0x197   : > { %v417_v48 = vadd.f32 %v738_v46, %v416_v47 }
 0x199   : > { %v418_v49 = vrot.slane %v417_v48, 2 }
 0x19b   : > { %v419_v50 = vadd.f32 %v418_v49, %v417_v48 }
 0x19d   : > { %v420_v51 = vrot.slane %v419_v50, 1 }
 0x19f   : > { %v421_v52 = vadd.f32 %v420_v51, %v419_v50 }
 0x1a1   : > { %739 = vrcp.f32 %v421_v52 }
 0x1a7   : > { %v740_v55 = vpop.eup %739 }
 0x1a8   : > { %v423_v56 = vmul.f32 %v740_v55, %v738_v46 }
 0x1aa   : > { %v429_v58 = vand.u32 4294967288, %v423_v56  ;;  %424 = vst [vmem:[%s1011_s22] sm:$0xff] %v423_v56 }
 0x1ac   : > { %v430_v59 = vor.u32 %v429_v58, %v427_v57 }
 0x1ae   : > { %v431_v60 = vrot.slane %v430_v59, 4 }
 0x1b0   : > { %vm432_vm5 = vcmp.gt.s32.totalorder %v430_v59, %v431_v60 }
 0x1b1   : > { %v433_v61 = vsel %vm432_vm5, %v430_v59, %v431_v60 }
 0x1b2   : > { %v434_v62 = vrot.slane %v433_v61, 2 }
 0x1b4   : > { %vm435_vm6 = vcmp.gt.s32.totalorder %v433_v61, %v434_v62 }
 0x1b5   : > { %v436_v63 = vsel %vm435_vm6, %v433_v61, %v434_v62 }
 0x1b6   : > { %v437_v0 = vrot.slane %v436_v63, 1 }
 0x1b8   : > { %vm438_vm7 = vcmp.gt.s32.totalorder %v436_v63, %v437_v0 }
 0x1b9   : > { %v439_v1 = vsel %vm438_vm7, %v436_v63, %v437_v0 }
 0x1ba   : > { %v440_v2 = vand.u32 7, %v439_v1  ;;  %v442_v13 = vand.u32 4294967288, %v439_v1 }
 0x1bc   : > { %v1014_v3 = vsub.s32 7, %v440_v2 }
 0x1be   : > { %vm444_vm8 = vcmp.eq.s32.totalorder %v1005_v54, %v1014_v3 }
 0x1bf   : > { %v445_v4 = vsel %vm444_vm8, -1.0, %v423_v56 }
 0x1c0   : > { %v447_v5 = vand.u32 4294967288, %v445_v4 }
 0x1c2   : > { %v448_v6 = vor.u32 %v447_v5, %v427_v57 }
 0x1c4   : > { %v449_v7 = vrot.slane %v448_v6, 4 }
 0x1c6   : > { %vm450_vm9 = vcmp.gt.s32.totalorder %v448_v6, %v449_v7 }
 0x1c7   : > { %v451_v8 = vsel %vm450_vm9, %v448_v6, %v449_v7 }
 0x1c8   : > { %v452_v9 = vrot.slane %v451_v8, 2 }
 0x1ca   : > { %vm453_vm10 = vcmp.gt.s32.totalorder %v451_v8, %v452_v9 }
 0x1cb   : > { %v454_v10 = vsel %vm453_vm10, %v451_v8, %v452_v9 }
 0x1cc   : > { %v455_v11 = vrot.slane %v454_v10, 1 }
 0x1ce   : > { %vm456_vm11 = vcmp.gt.s32.totalorder %v454_v10, %v455_v11 }
 0x1cf   : > { %v457_v12 = vsel %vm456_vm11, %v454_v10, %v455_v11 }
 0x1d0   : > { %v458_v14 = vand.u32 7, %v457_v12  ;;  %v460_v15 = vand.u32 4294967288, %v457_v12 }
 0x1d2   : > { %v459_v16 = vsub.s32 7, %v458_v14  ;;  %v462_v17 = vsub.f32 %v460_v15, %v442_v13 }
 0x1d4   : > { %v463_v18 = vmul.f32 1.442695, %v462_v17  ;;  %v466_v19 = vsel %vm465_vm12, %v1014_v3, %v459_v16 }
 0x1d5   : > { %467 = vst [vmem:[%s257_s18] sm:$0x3] %v466_v19 }
 0x1d6   : > { %741 = vpow2.f32 %v463_v18 }
 0x1d7   : > { %772 = shalt.err (!%p769_p3)
}
 0x1d8   : > { %687 = dma.vmem_to_hbm [thread:$0]  (%p947_p5), %s513_s19, 32, %s515_s27, %s481_s29  }
 0x1d9   : > { %s787_s16 = sshra.s32 %s1037_s0, 4  ;;  %s793_s10 = scalar_lea.hbm %s1109_s6, 24  ;;  %s788_s16 = int_to_ptr.hbm [resolvable:$true] %s787_s16 }
 0x1da   : > { %s789_s17 = scalar_lea.hbm %s788_s16, 8  ;;  %p794_p9 = scmp.lt.s32.totalorder %s788_s16, %s1109_s6 }
 0x1db   : > { %p790_p4 = scmp.ne.s32.totalorder %s788_s16, %s789_s17  ;;  %p795_p10 = scmp.lt.s32.totalorder %s793_s10, %s789_s17 }
 0x1dd   : > { %p791_p7 = pnand %p790_p4, %p947_p5  ;;  %p796_p11 = por %p795_p10, %p794_p9 }
 0x1df   : > { %p792_p8 = pneg %p791_p7 }
 0x1e1   : > { %p797_p12 = pnand %p796_p11, %p792_p8 }
 0x1e3   : > { %800 = shalt.err (!%p797_p12)
}
 0x1e4   : > { %688 = dma.vmem_to_hbm [thread:$0]  (%p947_p5), %s1035_s21, 128, %s1037_s0, %s481_s29   ;;  %v742_v20 = vpop.eup %741  ;;  %vm471_vm13 = vcmp.eq.s32.totalorder %v1005_v54, %v459_v16 }
 0x1e5   : > { %v468_v21 = vadd.f32 1.0, %v742_v20  ;;  %s496_s13 = scalar_lea.hbm %s1107_s4, %s681_s30  ;;  %s1116_s14 = sshll.u32 %s1003_s20, 3 }
 0x1e6   : > { %s250_s15 = scalar_lea.vmem [#allocation3], %s1116_s14  ;;  %s500_s17 = sshll.u32 %s496_s13, 4  ;;  %s501_s17 = int_to_ptr.hbm [resolvable:$true] %s500_s17 }
 0x1e7   : > { %743 = vrcp.f32 %v468_v21  ;;  %s498_s16 = sshll.u32 %s250_s15, 4  ;;  %s476_s0 = scalar_lea.sflag [#allocation4], %s1003_s20  ;;  %s499_s16 = int_to_ptr.vmem [resolvable:$true] %s498_s16 }
 0x1e8   : > { %s815_s3 = sshra.s32 %s501_s17, 4  ;;  %s821_s18 = scalar_lea.hbm %s1107_s4, 24  ;;  %s816_s3 = int_to_ptr.hbm [resolvable:$true] %s815_s3 }
 0x1e9   : > { %s817_s21 = scalar_lea.hbm %s816_s3, 8  ;;  %p822_p2 = scmp.lt.s32.totalorder %s816_s3, %s1107_s4 }
 0x1ea   : > { %p818_p13 = scmp.ne.s32.totalorder %s816_s3, %s817_s21  ;;  %p823_p3 = scmp.lt.s32.totalorder %s821_s18, %s817_s21 }
 0x1ec   : > { %p819_p0 = pnand %p818_p13, %p947_p5  ;;  %p824_p4 = por %p823_p3, %p822_p2 }
 0x1ed   : > { %v744_v22 = vpop.eup %743 }
 0x1ee   : > { %v470_v23 = vsel %vm444_vm8, %v744_v22, 0.0  ;;  %v472_v24 = vmul.f32 %v744_v22, %v742_v20  ;;  %p820_p1 = pneg %p819_p0 }
 0x1f0   : > { %v473_v25 = vsel %vm471_vm13, %v472_v24, %v470_v23  ;;  %p825_p7 = pnand %p824_p4, %p820_p1 }
 0x1f1   : > { %474 = vst [vmem:[%s250_s15] sm:$0xff] %v473_v25 }
 0x1f2   : > { %828 = shalt.err (!%p825_p7)
}
 0x1f3   : > { %686 = dma.vmem_to_hbm [thread:$0]  (%p947_p5), %s499_s16, 128, %s501_s17, %s476_s0  }
 0x1f4 PF: > { %p702_p8 = scmp.ge.s32.totalorder %s867_s26, 2  ;;  %s540_s20 = sand.u32 1, %s855_s23  }
 0x1f5   : > { %s541_s11 = scalar_lea.sflag [#allocation4], %s540_s20 }
 0x1f6   : > { %p693_p9 = pnand %p702_p8, %p951_p6 }
 0x1f8   : > { %p694_p10 = pneg %p693_p9 }
 0x1fa   : > { %846 = dma.done.wait (%p694_p10), %s541_s11, 128  }
 0x1fb   : > { %848 = vsyncadd (%p694_p10), %s541_s11, 4294967168  ;;  %s1117_s12 = sadd.s32 4294967294, %s867_s26  }
 0x1fc   : > { %s550_s27 = sand.u32 1, %s1117_s12  }
 0x1fd   : > { %s551_s19 = scalar_lea.sflag [#allocation6], %s550_s27 }
 0x1fe   : > { %850 = dma.done.wait (%p694_p10), %s551_s19, 160  }
 0x1ff   : > { %852 = vsyncadd (%p694_p10), %s551_s19, 4294967136  ;;  %p21_p5 = scmp.ge.s32.totalorder %s932_s28, 5   ;;  %s1118_s23 = smov %s859_s24 }
 0x200   : > { %s1119_s24 = smov %s863_s25  ;;  %s1120_s25 = smov %s945_s7 }
 0x201   : > { %s1121_s26 = smov %s932_s28  ;;  %23 = sbr.rel (!%p21_p5) target bundleno = 8 (0x8), region = 103 }
 0x206   :  { %567 = vsyncpa [#allocation4], 1 }
 0x207   :  { %569 = vsyncpa [#allocation4 + $0x1], 1 }
 0x208   :  { %570 = vsyncpa [#allocation6], 1 }
 0x209   :  { %572 = vsyncpa [#allocation6 + $0x1], 1 }

</bundles_post_ra>
